<compile_context>
chip_gen: v5e
topology: v5e:2x2
jax: 0.10.0
libtpu: 0.0.40
codegen_flags: <defaults>
</compile_context>

<pallas_src>
import math
from functools import partial

import jax
import jax.numpy as jnp
import numpy as np
from jax.experimental import pallas as pl
from jax.experimental.pallas import tpu as pltpu


def _mha_flash_kernel(*refs, num_heads, head_dim, tkv, atn_mask, use_pad):
    """One (batch, kv-block) grid step of the fused MHA forward.

    Inputs (pad_ref only when use_pad):
      x_ref    [1, S, D]  bf16   resident across the kv axis
      wq_ref   [D, D]     bf16   head-major Q weights, 1/sqrt(hd) pre-folded
      bq_ref   [1, D]     f32    (also pre-scaled)
      wkv_ref  [D, 2D]    bf16   [K | V] head-major weights
      bkv_ref  [1, 2D]    f32
      wout_ref [H, hd, D] bf16   output projection split by reshape row-block
      bout_ref [1, D]     f32
      pad_ref  [1, S, 1]  f32    per-position pad mask
    Output:
      o_ref    [1, S, D]  f32
    Scratch (persist across the kv axis):
      q_sc   [S, D]    f32   all-heads Q (head-major columns)
      m_sc   [H*S, 1]  f32   online-softmax running max   (rows = h*S + s)
      l_sc   [H*S, 1]  f32   online-softmax running denom
      acc_sc [H*S, hd] f32   un-normalized per-head attention values
    """
    if use_pad:
        (x_ref, wq_ref, bq_ref, wkv_ref, bkv_ref, wout_ref, bout_ref, pad_ref,
         o_ref, q_sc, m_sc, l_sc, acc_sc) = refs
    else:
        (x_ref, wq_ref, bq_ref, wkv_ref, bkv_ref, wout_ref, bout_ref,
         o_ref, q_sc, m_sc, l_sc, acc_sc) = refs
        pad_ref = None

    H, hd = num_heads, head_dim
    _, S, D = x_ref.shape
    kv = pl.program_id(1)

    # -------- init: Q projection + accumulator reset (first KV block) --------
    @pl.when(kv == 0)
    def _init():
        # One lane-dense [S, D] @ [D, D] matmul for every head's Q
        # (no broadcast of x to [H, S, D], no per-head N=hd matmuls).
        q_sc[...] = (jnp.dot(x_ref[0], wq_ref[...],
                             preferred_element_type=jnp.float32) + bq_ref[...])
        m_sc[...] = jnp.full(m_sc.shape, -jnp.inf, jnp.float32)
        l_sc[...] = jnp.zeros(l_sc.shape, jnp.float32)
        acc_sc[...] = jnp.zeros(acc_sc.shape, jnp.float32)

    # -------- K/V projection for this KV block (one lane-dense matmul) -------
    start = pl.multiple_of(kv * tkv, tkv)
    x_kv = x_ref[0, pl.ds(start, tkv), :]                           # [tkv, D] bf16
    kv_all = (jnp.dot(x_kv, wkv_ref[...],
                      preferred_element_type=jnp.float32) + bkv_ref[...])
    k_all = kv_all[:, :D].astype(jnp.bfloat16)                      # [tkv, D]
    v_f32 = kv_all[:, D:]                                           # [tkv, D]

    if use_pad:
        # PyTorch applies the pad mask AFTER softmax (masked_fill 0, no renorm):
        #   attn_masked = softmax(s) * pad_q * pad_k
        # so the key-side factor folds into V rows and the query-side factor
        # multiplies the numerator; the denominator l stays un-masked.
        pad_q = pad_ref[0]                                          # [S, 1]
        pad_k = pad_ref[0, pl.ds(start, tkv), :]                    # [tkv, 1]
        v_f32 = v_f32 * pad_k
    v_all = v_f32.astype(jnp.bfloat16)                              # [tkv, D]

    if atn_mask:
        # causal mask built once per KV step (hoisted out of the head loop)
        row = jax.lax.broadcasted_iota(jnp.int32, (S, tkv), 0)
        col = jax.lax.broadcasted_iota(jnp.int32, (S, tkv), 1) + kv * tkv
        causal = col > row                                          # [S, tkv]

    # -------- online softmax, per head (static unroll) ------------------------
    # TODO(synk): for very long sequences also tile the query axis (extra
    # "parallel" grid dim -> true flash tiling + 2-TC sharding on v7x) and skip
    # fully-masked causal KV tiles.
    for h in range(H):
        r0, r1 = h * S, (h + 1) * S                                 # scratch rows
        q_h = q_sc[:, h * hd:(h + 1) * hd].astype(jnp.bfloat16)     # [S, hd]
        k_h = k_all[:, h * hd:(h + 1) * hd]                         # [tkv, hd]
        v_h = v_all[:, h * hd:(h + 1) * hd]                         # [tkv, hd]

        s_h = jax.lax.dot_general(                                  # q_h @ k_h.T
            q_h, k_h, (((1,), (1,)), ((), ())),
            preferred_element_type=jnp.float32)                     # [S, tkv]
        if atn_mask:
            s_h = jnp.where(causal, -jnp.inf, s_h)

        m_prev = m_sc[r0:r1, :]                                     # [S, 1]
        l_prev = l_sc[r0:r1, :]
        m_new = jnp.maximum(m_prev, jnp.max(s_h, axis=-1, keepdims=True))
        alpha = jnp.exp(m_prev - m_new)
        p = jnp.exp(s_h - m_new)                                    # [S, tkv] f32
        # denominator accumulated BEFORE any pad masking (post-softmax mask)
        l_sc[r0:r1, :] = alpha * l_prev + jnp.sum(p, axis=-1, keepdims=True)
        m_sc[r0:r1, :] = m_new

        pv = jnp.dot(p.astype(jnp.bfloat16), v_h,
                     preferred_element_type=jnp.float32)            # [S, hd]
        if use_pad:
            pv = pv * pad_q                                         # query-side factor
        acc_sc[r0:r1, :] = alpha * acc_sc[r0:r1, :] + pv

    # -------- finalize: normalize + direct reshape + output projection -------
    @pl.when(kv == pl.num_programs(1) - 1)
    def _finalize():
        l = l_sc[...]                                               # [H*S, 1]
        inv = pl.reciprocal(l, approx=True)                         # EUP slot
        inv = inv * (2.0 - l * inv)          # one Newton step -> ~f32 accuracy
        acc_sc[...] = acc_sc[...] * inv      # normalized values, rows = h*S + s

        # PyTorch reshapes values [H, S, hd] DIRECTLY to [S, H*hd] (row-major
        # flat reinterpret).  Column block j of that matrix is rows
        # j, j+H, j+2H, ... of acc_sc -> strided scratch reads, each feeding one
        # [S, hd] @ [hd, D] slice of the output projection.  No selection
        # matmuls, no concatenate, no cross-lane reshape.
        out = jnp.zeros((S, D), jnp.float32)
        for j in range(H):
            rows_j = acc_sc[pl.ds(j, S, stride=H), :].astype(jnp.bfloat16)
            out = out + jnp.dot(rows_j, wout_ref[j],
                                preferred_element_type=jnp.float32)
        o_ref[0] = (out + bout_ref[...]).astype(o_ref.dtype)        # lane-dense [S, D]


def multi_head_attention(x, params, num_heads, pad_mask=None, atn_mask=False):
    """Pallas-TPU forward matching MultiHeadAttention.forward (PyTorch)."""
    B, S, D = x.shape
    H = num_heads
    hd = D // H
    wqkv_t, bqkv, wout_t, bout = params

    # KV-block size: full sequence for short inputs; capped so the per-step
    # live set is O(S * tkv) instead of O(H * S^2) at real model sizes.
    # TODO(synk): re-derive tkv per generation (v7x 64 MiB VMEM -> <=256, v5e
    # prefer 128-multiples) and support S % tkv != 0 via a ragged last block.
    tkv = S if S <= 256 else 256
    assert S % tkv == 0, "sequence length must be a multiple of the KV block"
    num_kv = S // tkv

    scale = 1.0 / math.sqrt(hd)

    # PyTorch fused-QKV columns are ordered (head, {q,k,v}, hd).  Re-pack once
    # into head-major per-part layouts so the kernel runs lane-dense 2D matmuls
    # and only does cheap static lane slices per head.  Matmul operands are
    # cast to bf16 (f32 accumulation in-kernel); biases stay f32.
    w4 = wqkv_t.reshape(D, H, 3, hd)
    b3 = bqkv.reshape(H, 3, hd)
    w_q = (w4[:, :, 0, :].reshape(D, D) * scale).astype(jnp.bfloat16)  # scale folded
    b_q = (b3[:, 0, :].reshape(1, D) * scale).astype(jnp.float32)
    w_kv = jnp.concatenate([w4[:, :, 1, :].reshape(D, D),
                            w4[:, :, 2, :].reshape(D, D)], axis=1).astype(jnp.bfloat16)
    b_kv = jnp.concatenate([b3[:, 1, :].reshape(1, D),
                            b3[:, 2, :].reshape(1, D)], axis=1).astype(jnp.float32)
    w_out = wout_t.reshape(H, hd, D).astype(jnp.bfloat16)
    b_out = bout.reshape(1, D).astype(jnp.float32)

    use_pad = pad_mask is not None

    operands = [x.astype(jnp.bfloat16), w_q, b_q, w_kv, b_kv, w_out, b_out]
    in_specs = [
        pl.BlockSpec((1, S, D), lambda b, k: (b, 0, 0)),      # x (resident per b)
        pl.BlockSpec((D, D), lambda b, k: (0, 0)),            # w_q
        pl.BlockSpec((1, D), lambda b, k: (0, 0)),            # b_q
        pl.BlockSpec((D, 2 * D), lambda b, k: (0, 0)),        # w_kv
        pl.BlockSpec((1, 2 * D), lambda b, k: (0, 0)),        # b_kv
        pl.BlockSpec((H, hd, D), lambda b, k: (0, 0, 0)),     # w_out
        pl.BlockSpec((1, D), lambda b, k: (0, 0)),            # b_out
    ]
    if use_pad:
        # O(B*S) pad staging instead of a dense [B, S, S] mask.
        operands.append(pad_mask.astype(jnp.float32)[:, :, None])   # [B, S, 1]
        in_specs.append(pl.BlockSpec((1, S, 1), lambda b, k: (b, 0, 0)))

    kernel = partial(_mha_flash_kernel, num_heads=H, head_dim=hd, tkv=tkv,
                     atn_mask=atn_mask, use_pad=use_pad)

    return pl.pallas_call(
        kernel,
        out_shape=jax.ShapeDtypeStruct((B, S, D), jnp.float32),
        grid=(B, num_kv),
        in_specs=in_specs,
        out_specs=pl.BlockSpec((1, S, D), lambda b, k: (b, 0, 0)),
        scratch_shapes=[
            pltpu.VMEM((S, D), jnp.float32),          # Q (all heads, head-major)
            pltpu.VMEM((H * S, 1), jnp.float32),      # online-softmax running max
            pltpu.VMEM((H * S, 1), jnp.float32),      # online-softmax running denom
            pltpu.VMEM((H * S, hd), jnp.float32),     # per-head value accumulator
        ],
        # TODO(synk): raise vmem_limit_bytes (v6e/v5e) once real tile sizes are
        # chosen; defaults are fine at these shapes.
        compiler_params=pltpu.CompilerParams(
            dimension_semantics=("parallel", "arbitrary")),
    )(*operands)


def reference_mha(x, params, num_heads, pad_mask=None, atn_mask=False):
    """Pure-JAX f32 mirror of the PyTorch forward, for verification."""
    B, S, D = x.shape
    hd = D // num_heads
    wqkv_t, bqkv, wout_t, bout = params
    qkv = x @ wqkv_t + bqkv
    qkv = qkv.reshape(B, S, num_heads, 3 * hd).transpose(0, 2, 1, 3)
    q, k, v = qkv[..., :hd], qkv[..., hd:2 * hd], qkv[..., 2 * hd:]
    scaled = jnp.einsum("bhqd,bhkd->bhqk", q, k) / math.sqrt(hd)
    if atn_mask:
        scaled = scaled + jnp.triu(jnp.full((S, S), -jnp.inf, jnp.float32), k=1)
    attn = jax.nn.softmax(scaled, axis=-1)
    if pad_mask is not None:
        pm = pad_mask[:, None, None, :] * pad_mask[:, None, :, None]
        attn = jnp.where(pm == 0, 0.0, attn)
    values = jnp.einsum("bhqk,bhkd->bhqd", attn, v)
    values = values.reshape(B, S, num_heads * hd)  # same direct reshape as the module
    return values @ wout_t + bout


if __name__ == "__main__":
    # d_model=32, num_heads=4 -> head_dim=8 ; batch=2, seq=8
    B, S, D, H = 2, 8, 32, 4

    key = jax.random.PRNGKey(0)
    kx, k1, k2, k3, k4, kp = jax.random.split(key, 6)

    x = jax.random.normal(kx, (B, S, D), jnp.float32)

    # Deterministic nn.Linear-style init, stored already transposed to [in, out].
    bound = 1.0 / math.sqrt(D)
    wqkv_t = jax.random.uniform(k1, (D, 3 * D), jnp.float32, -bound, bound)
    bqkv = jax.random.uniform(k2, (3 * D,), jnp.float32, -bound, bound)
    wout_t = jax.random.uniform(k3, (D, D), jnp.float32, -bound, bound)
    bout = jax.random.uniform(k4, (D,), jnp.float32, -bound, bound)
    params = (wqkv_t, bqkv, wout_t, bout)

    pad = (jax.random.uniform(kp, (B, S)) > 0.3).astype(jnp.float32)

    # Tolerance reflects bf16 MXU operands (f32 accumulation, f32 softmax with a
    # Newton-refined reciprocal).  Semantic errors (wrong mask / reshape /
    # weight re-pack) would show up at O(0.1-1).
    for pm, am in [(None, False), (None, True), (pad, False), (pad, True)]:
        out = multi_head_attention(x, params, num_heads=H, pad_mask=pm, atn_mask=am)
        out = jax.block_until_ready(out)
        ref = reference_mha(x, params, num_heads=H, pad_mask=pm, atn_mask=am)
        assert out.shape == (B, S, D)
        np.testing.assert_allclose(np.asarray(out), np.asarray(ref),
                                   atol=3e-2, rtol=2e-2)

    print("KERNEL_OK")
</pallas_src>

<mosaic_0001>
module attributes {stable_mosaic.version = 11 : i64} {
  func.func @_mha_flash_kernel(%arg0: i32, %arg1: i32, %arg2: memref<1x8x32xbf16, #tpu.memory_space<vmem>>, %arg3: memref<32x32xbf16, #tpu.memory_space<vmem>>, %arg4: memref<1x32xf32, #tpu.memory_space<vmem>>, %arg5: memref<32x64xbf16, #tpu.memory_space<vmem>>, %arg6: memref<1x64xf32, #tpu.memory_space<vmem>>, %arg7: memref<4x8x32xbf16, #tpu.memory_space<vmem>>, %arg8: memref<1x32xf32, #tpu.memory_space<vmem>>, %arg9: memref<1x8x32xf32, #tpu.memory_space<vmem>>, %arg10: memref<8x32xf32, #tpu.memory_space<vmem>>, %arg11: memref<32x1xf32, #tpu.memory_space<vmem>>, %arg12: memref<32x1xf32, #tpu.memory_space<vmem>>, %arg13: memref<32x8xf32, #tpu.memory_space<vmem>>) attributes {dimension_semantics = [#tpu.dimension_semantics<parallel>, #tpu.dimension_semantics<arbitrary>], iteration_bounds = array<i64: 2, 1>, scalar_prefetch = 0 : i64, scratch_operands = 4 : i64, tpu.core_type = #tpu.core_type<tc>, window_params = [{transform_indices = @transform_0, window_bounds = array<i64: 1, 8, 32>}, {pipeline_mode = #tpu.pipeline_mode<synchronous>, transform_indices = @transform_1, window_bounds = array<i64: 32, 32>}, {pipeline_mode = #tpu.pipeline_mode<synchronous>, transform_indices = @transform_2, window_bounds = array<i64: 1, 32>}, {pipeline_mode = #tpu.pipeline_mode<synchronous>, transform_indices = @transform_3, window_bounds = array<i64: 32, 64>}, {pipeline_mode = #tpu.pipeline_mode<synchronous>, transform_indices = @transform_4, window_bounds = array<i64: 1, 64>}, {pipeline_mode = #tpu.pipeline_mode<synchronous>, transform_indices = @transform_5, window_bounds = array<i64: 4, 8, 32>}, {pipeline_mode = #tpu.pipeline_mode<synchronous>, transform_indices = @transform_6, window_bounds = array<i64: 1, 32>}, {transform_indices = @transform_7, window_bounds = array<i64: 1, 8, 32>}]} {
    %c0_i32 = arith.constant 0 : i32
    %0 = arith.cmpi eq, %arg1, %c0_i32 : i32
    %1 = arith.extui %0 : i1 to i32
    %c0_i32_0 = arith.constant 0 : i32
    %2 = arith.cmpi ne, %1, %c0_i32_0 : i32
    scf.if %2 {
      %c0_77 = arith.constant 0 : index
      %c0_78 = arith.constant 0 : index
      %c0_79 = arith.constant 0 : index
      %132 = vector.load %arg2[%c0_77, %c0_78, %c0_79] : memref<1x8x32xbf16, #tpu.memory_space<vmem>>, vector<1x8x32xbf16>
      %133 = vector.shape_cast %132 : vector<1x8x32xbf16> to vector<8x32xbf16>
      %c0_80 = arith.constant 0 : index
      %c0_81 = arith.constant 0 : index
      %134 = vector.load %arg3[%c0_80, %c0_81] : memref<32x32xbf16, #tpu.memory_space<vmem>>, vector<32x32xbf16>
      %cst_82 = arith.constant dense<0.000000e+00> : vector<8x32xf32>
      %135 = tpu.matmul %133, %134, %cst_82 {dimension_numbers = #tpu.dot_dimension_numbers<[1], [0], [0], [1], [0, 0, 1, 1], [], []>} : vector<8x32xbf16>, vector<32x32xbf16>, vector<8x32xf32> -> vector<8x32xf32>
      %c0_83 = arith.constant 0 : index
      %c0_84 = arith.constant 0 : index
      %136 = vector.load %arg4[%c0_83, %c0_84] : memref<1x32xf32, #tpu.memory_space<vmem>>, vector<1x32xf32>
      %137 = vector.broadcast %136 : vector<1x32xf32> to vector<8x32xf32>
      %138 = arith.addf %135, %137 : vector<8x32xf32>
      %c0_85 = arith.constant 0 : index
      %c0_86 = arith.constant 0 : index
      %139 = vector.load %arg10[%c0_85, %c0_86] : memref<8x32xf32, #tpu.memory_space<vmem>>, vector<8x32xf32>
      tpu.vector_store %arg10[%c0_85, %c0_86], %138 {strides = array<i32>} : memref<8x32xf32, #tpu.memory_space<vmem>>, vector<8x32xf32>,
      %cst_87 = arith.constant 0xFF800000 : f32
      %140 = vector.broadcast %cst_87 : f32 to vector<32x1xf32>
      %c0_88 = arith.constant 0 : index
      %c0_89 = arith.constant 0 : index
      %141 = vector.load %arg11[%c0_88, %c0_89] : memref<32x1xf32, #tpu.memory_space<vmem>>, vector<32x1xf32>
      tpu.vector_store %arg11[%c0_88, %c0_89], %140 {strides = array<i32>} : memref<32x1xf32, #tpu.memory_space<vmem>>, vector<32x1xf32>,
      %cst_90 = arith.constant 0.000000e+00 : f32
      %142 = vector.broadcast %cst_90 : f32 to vector<32x1xf32>
      %c0_91 = arith.constant 0 : index
      %c0_92 = arith.constant 0 : index
      %143 = vector.load %arg12[%c0_91, %c0_92] : memref<32x1xf32, #tpu.memory_space<vmem>>, vector<32x1xf32>
      tpu.vector_store %arg12[%c0_91, %c0_92], %142 {strides = array<i32>} : memref<32x1xf32, #tpu.memory_space<vmem>>, vector<32x1xf32>,
      %cst_93 = arith.constant 0.000000e+00 : f32
      %144 = vector.broadcast %cst_93 : f32 to vector<32x8xf32>
      %c0_94 = arith.constant 0 : index
      %c0_95 = arith.constant 0 : index
      %145 = vector.load %arg13[%c0_94, %c0_95] : memref<32x8xf32, #tpu.memory_space<vmem>>, vector<32x8xf32>
      tpu.vector_store %arg13[%c0_94, %c0_95], %144 {strides = array<i32>} : memref<32x8xf32, #tpu.memory_space<vmem>>, vector<32x8xf32>,
    } else {
    }
    %c8_i32 = arith.constant 8 : i32
    %3 = arith.muli %arg1, %c8_i32 : i32
    %4 = tpu.assume_multiple %3, 8 : i32
    %c0 = arith.constant 0 : index
    %5 = arith.index_cast %4 : i32 to index
    %c0_1 = arith.constant 0 : index
    %6 = vector.load %arg2[%c0, %5, %c0_1] : memref<1x8x32xbf16, #tpu.memory_space<vmem>>, vector<1x8x32xbf16>
    %7 = vector.shape_cast %6 : vector<1x8x32xbf16> to vector<8x32xbf16>
    %c0_2 = arith.constant 0 : index
    %c0_3 = arith.constant 0 : index
    %8 = vector.load %arg5[%c0_2, %c0_3] : memref<32x64xbf16, #tpu.memory_space<vmem>>, vector<32x64xbf16>
    %cst = arith.constant dense<0.000000e+00> : vector<8x64xf32>
    %9 = tpu.matmul %7, %8, %cst {dimension_numbers = #tpu.dot_dimension_numbers<[1], [0], [0], [1], [0, 0, 1, 1], [], []>} : vector<8x32xbf16>, vector<32x64xbf16>, vector<8x64xf32> -> vector<8x64xf32>
    %c0_4 = arith.constant 0 : index
    %c0_5 = arith.constant 0 : index
    %10 = vector.load %arg6[%c0_4, %c0_5] : memref<1x64xf32, #tpu.memory_space<vmem>>, vector<1x64xf32>
    %11 = vector.broadcast %10 : vector<1x64xf32> to vector<8x64xf32>
    %12 = arith.addf %9, %11 : vector<8x64xf32>
    %13 = vector.extract_strided_slice %12 {offsets = [0, 0], sizes = [8, 32], strides = [1, 1]} : vector<8x64xf32> to vector<8x32xf32>
    %14 = arith.truncf %13 : vector<8x32xf32> to vector<8x32xbf16>
    %15 = vector.extract_strided_slice %12 {offsets = [0, 32], sizes = [8, 32], strides = [1, 1]} : vector<8x64xf32> to vector<8x32xf32>
    %16 = arith.truncf %15 : vector<8x32xf32> to vector<8x32xbf16>
    %c0_6 = arith.constant 0 : index
    %c0_7 = arith.constant 0 : index
    %17 = vector.load %arg10[%c0_6, %c0_7] : memref<8x32xf32, #tpu.memory_space<vmem>>, vector<8x8xf32>
    %18 = arith.truncf %17 : vector<8x8xf32> to vector<8x8xbf16>
    %19 = vector.extract_strided_slice %14 {offsets = [0, 0], sizes = [8, 8], strides = [1, 1]} : vector<8x32xbf16> to vector<8x8xbf16>
    %20 = vector.extract_strided_slice %16 {offsets = [0, 0], sizes = [8, 8], strides = [1, 1]} : vector<8x32xbf16> to vector<8x8xbf16>
    %cst_8 = arith.constant dense<0.000000e+00> : vector<8x8xf32>
    %21 = tpu.matmul %18, %19, %cst_8 {dimension_numbers = #tpu.dot_dimension_numbers<[1], [1], [0], [0], [0, 0, 1, 0], [], []>} : vector<8x8xbf16>, vector<8x8xbf16>, vector<8x8xf32> -> vector<8x8xf32>
    %c0_9 = arith.constant 0 : index
    %c0_10 = arith.constant 0 : index
    %22 = vector.load %arg11[%c0_9, %c0_10] : memref<32x1xf32, #tpu.memory_space<vmem>>, vector<8x1xf32>
    %c0_11 = arith.constant 0 : index
    %c0_12 = arith.constant 0 : index
    %23 = vector.load %arg12[%c0_11, %c0_12] : memref<32x1xf32, #tpu.memory_space<vmem>>, vector<8x1xf32>
    %cst_13 = arith.constant dense<0xFF800000> : vector<8xf32>
    %24 = vector.multi_reduction <maximumf>, %21, %cst_13 [1] : vector<8x8xf32> to vector<8xf32>
    %25 = vector.shape_cast %24 : vector<8xf32> to vector<8x1xf32>
    %26 = arith.maximumf %22, %25 : vector<8x1xf32>
    %27 = arith.subf %22, %26 : vector<8x1xf32>
    %28 = math.exp %27 : vector<8x1xf32>
    %29 = vector.broadcast %26 : vector<8x1xf32> to vector<8x8xf32>
    %30 = arith.subf %21, %29 : vector<8x8xf32>
    %31 = math.exp %30 : vector<8x8xf32>
    %32 = arith.mulf %28, %23 : vector<8x1xf32>
    %cst_14 = arith.constant dense<0.000000e+00> : vector<8xf32>
    %33 = vector.multi_reduction <add>, %31, %cst_14 [1] : vector<8x8xf32> to vector<8xf32>
    %34 = vector.shape_cast %33 : vector<8xf32> to vector<8x1xf32>
    %35 = arith.addf %32, %34 : vector<8x1xf32>
    %c0_15 = arith.constant 0 : index
    %c0_16 = arith.constant 0 : index
    %36 = vector.load %arg12[%c0_15, %c0_16] : memref<32x1xf32, #tpu.memory_space<vmem>>, vector<8x1xf32>
    tpu.vector_store %arg12[%c0_15, %c0_16], %35 {strides = array<i32>} : memref<32x1xf32, #tpu.memory_space<vmem>>, vector<8x1xf32>,
    %c0_17 = arith.constant 0 : index
    %c0_18 = arith.constant 0 : index
    %37 = vector.load %arg11[%c0_17, %c0_18] : memref<32x1xf32, #tpu.memory_space<vmem>>, vector<8x1xf32>
    tpu.vector_store %arg11[%c0_17, %c0_18], %26 {strides = array<i32>} : memref<32x1xf32, #tpu.memory_space<vmem>>, vector<8x1xf32>,
    %38 = arith.truncf %31 : vector<8x8xf32> to vector<8x8xbf16>
    %cst_19 = arith.constant dense<0.000000e+00> : vector<8x8xf32>
    %39 = tpu.matmul %38, %20, %cst_19 {dimension_numbers = #tpu.dot_dimension_numbers<[1], [0], [0], [1], [0, 0, 1, 1], [], []>} : vector<8x8xbf16>, vector<8x8xbf16>, vector<8x8xf32> -> vector<8x8xf32>
    %c0_20 = arith.constant 0 : index
    %c0_21 = arith.constant 0 : index
    %40 = vector.load %arg13[%c0_20, %c0_21] : memref<32x8xf32, #tpu.memory_space<vmem>>, vector<8x8xf32>
    %41 = vector.broadcast %28 : vector<8x1xf32> to vector<8x8xf32>
    %42 = arith.mulf %41, %40 : vector<8x8xf32>
    %43 = arith.addf %42, %39 : vector<8x8xf32>
    %c0_22 = arith.constant 0 : index
    %c0_23 = arith.constant 0 : index
    %44 = vector.load %arg13[%c0_22, %c0_23] : memref<32x8xf32, #tpu.memory_space<vmem>>, vector<8x8xf32>
    tpu.vector_store %arg13[%c0_22, %c0_23], %43 {strides = array<i32>} : memref<32x8xf32, #tpu.memory_space<vmem>>, vector<8x8xf32>,
    %c0_24 = arith.constant 0 : index
    %c8 = arith.constant 8 : index
    %45 = vector.load %arg10[%c0_24, %c8] : memref<8x32xf32, #tpu.memory_space<vmem>>, vector<8x8xf32>
    %46 = arith.truncf %45 : vector<8x8xf32> to vector<8x8xbf16>
    %47 = vector.extract_strided_slice %14 {offsets = [0, 8], sizes = [8, 8], strides = [1, 1]} : vector<8x32xbf16> to vector<8x8xbf16>
    %48 = vector.extract_strided_slice %16 {offsets = [0, 8], sizes = [8, 8], strides = [1, 1]} : vector<8x32xbf16> to vector<8x8xbf16>
    %cst_25 = arith.constant dense<0.000000e+00> : vector<8x8xf32>
    %49 = tpu.matmul %46, %47, %cst_25 {dimension_numbers = #tpu.dot_dimension_numbers<[1], [1], [0], [0], [0, 0, 1, 0], [], []>} : vector<8x8xbf16>, vector<8x8xbf16>, vector<8x8xf32> -> vector<8x8xf32>
    %c8_26 = arith.constant 8 : index
    %c0_27 = arith.constant 0 : index
    %50 = vector.load %arg11[%c8_26, %c0_27] : memref<32x1xf32, #tpu.memory_space<vmem>>, vector<8x1xf32>
    %c8_28 = arith.constant 8 : index
    %c0_29 = arith.constant 0 : index
    %51 = vector.load %arg12[%c8_28, %c0_29] : memref<32x1xf32, #tpu.memory_space<vmem>>, vector<8x1xf32>
    %cst_30 = arith.constant dense<0xFF800000> : vector<8xf32>
    %52 = vector.multi_reduction <maximumf>, %49, %cst_30 [1] : vector<8x8xf32> to vector<8xf32>
    %53 = vector.shape_cast %52 : vector<8xf32> to vector<8x1xf32>
    %54 = arith.maximumf %50, %53 : vector<8x1xf32>
    %55 = arith.subf %50, %54 : vector<8x1xf32>
    %56 = math.exp %55 : vector<8x1xf32>
    %57 = vector.broadcast %54 : vector<8x1xf32> to vector<8x8xf32>
    %58 = arith.subf %49, %57 : vector<8x8xf32>
    %59 = math.exp %58 : vector<8x8xf32>
    %60 = arith.mulf %56, %51 : vector<8x1xf32>
    %cst_31 = arith.constant dense<0.000000e+00> : vector<8xf32>
    %61 = vector.multi_reduction <add>, %59, %cst_31 [1] : vector<8x8xf32> to vector<8xf32>
    %62 = vector.shape_cast %61 : vector<8xf32> to vector<8x1xf32>
    %63 = arith.addf %60, %62 : vector<8x1xf32>
    %c8_32 = arith.constant 8 : index
    %c0_33 = arith.constant 0 : index
    %64 = vector.load %arg12[%c8_32, %c0_33] : memref<32x1xf32, #tpu.memory_space<vmem>>, vector<8x1xf32>
    tpu.vector_store %arg12[%c8_32, %c0_33], %63 {strides = array<i32>} : memref<32x1xf32, #tpu.memory_space<vmem>>, vector<8x1xf32>,
    %c8_34 = arith.constant 8 : index
    %c0_35 = arith.constant 0 : index
    %65 = vector.load %arg11[%c8_34, %c0_35] : memref<32x1xf32, #tpu.memory_space<vmem>>, vector<8x1xf32>
    tpu.vector_store %arg11[%c8_34, %c0_35], %54 {strides = array<i32>} : memref<32x1xf32, #tpu.memory_space<vmem>>, vector<8x1xf32>,
    %66 = arith.truncf %59 : vector<8x8xf32> to vector<8x8xbf16>
    %cst_36 = arith.constant dense<0.000000e+00> : vector<8x8xf32>
    %67 = tpu.matmul %66, %48, %cst_36 {dimension_numbers = #tpu.dot_dimension_numbers<[1], [0], [0], [1], [0, 0, 1, 1], [], []>} : vector<8x8xbf16>, vector<8x8xbf16>, vector<8x8xf32> -> vector<8x8xf32>
    %c8_37 = arith.constant 8 : index
    %c0_38 = arith.constant 0 : index
    %68 = vector.load %arg13[%c8_37, %c0_38] : memref<32x8xf32, #tpu.memory_space<vmem>>, vector<8x8xf32>
    %69 = vector.broadcast %56 : vector<8x1xf32> to vector<8x8xf32>
    %70 = arith.mulf %69, %68 : vector<8x8xf32>
    %71 = arith.addf %70, %67 : vector<8x8xf32>
    %c8_39 = arith.constant 8 : index
    %c0_40 = arith.constant 0 : index
    %72 = vector.load %arg13[%c8_39, %c0_40] : memref<32x8xf32, #tpu.memory_space<vmem>>, vector<8x8xf32>
    tpu.vector_store %arg13[%c8_39, %c0_40], %71 {strides = array<i32>} : memref<32x8xf32, #tpu.memory_space<vmem>>, vector<8x8xf32>,
    %c0_41 = arith.constant 0 : index
    %c16 = arith.constant 16 : index
    %73 = vector.load %arg10[%c0_41, %c16] : memref<8x32xf32, #tpu.memory_space<vmem>>, vector<8x8xf32>
    %74 = arith.truncf %73 : vector<8x8xf32> to vector<8x8xbf16>
    %75 = vector.extract_strided_slice %14 {offsets = [0, 16], sizes = [8, 8], strides = [1, 1]} : vector<8x32xbf16> to vector<8x8xbf16>
    %76 = vector.extract_strided_slice %16 {offsets = [0, 16], sizes = [8, 8], strides = [1, 1]} : vector<8x32xbf16> to vector<8x8xbf16>
    %cst_42 = arith.constant dense<0.000000e+00> : vector<8x8xf32>
    %77 = tpu.matmul %74, %75, %cst_42 {dimension_numbers = #tpu.dot_dimension_numbers<[1], [1], [0], [0], [0, 0, 1, 0], [], []>} : vector<8x8xbf16>, vector<8x8xbf16>, vector<8x8xf32> -> vector<8x8xf32>
    %c16_43 = arith.constant 16 : index
    %c0_44 = arith.constant 0 : index
    %78 = vector.load %arg11[%c16_43, %c0_44] : memref<32x1xf32, #tpu.memory_space<vmem>>, vector<8x1xf32>
    %c16_45 = arith.constant 16 : index
    %c0_46 = arith.constant 0 : index
    %79 = vector.load %arg12[%c16_45, %c0_46] : memref<32x1xf32, #tpu.memory_space<vmem>>, vector<8x1xf32>
    %cst_47 = arith.constant dense<0xFF800000> : vector<8xf32>
    %80 = vector.multi_reduction <maximumf>, %77, %cst_47 [1] : vector<8x8xf32> to vector<8xf32>
    %81 = vector.shape_cast %80 : vector<8xf32> to vector<8x1xf32>
    %82 = arith.maximumf %78, %81 : vector<8x1xf32>
    %83 = arith.subf %78, %82 : vector<8x1xf32>
    %84 = math.exp %83 : vector<8x1xf32>
    %85 = vector.broadcast %82 : vector<8x1xf32> to vector<8x8xf32>
    %86 = arith.subf %77, %85 : vector<8x8xf32>
    %87 = math.exp %86 : vector<8x8xf32>
    %88 = arith.mulf %84, %79 : vector<8x1xf32>
    %cst_48 = arith.constant dense<0.000000e+00> : vector<8xf32>
    %89 = vector.multi_reduction <add>, %87, %cst_48 [1] : vector<8x8xf32> to vector<8xf32>
    %90 = vector.shape_cast %89 : vector<8xf32> to vector<8x1xf32>
    %91 = arith.addf %88, %90 : vector<8x1xf32>
    %c16_49 = arith.constant 16 : index
    %c0_50 = arith.constant 0 : index
    %92 = vector.load %arg12[%c16_49, %c0_50] : memref<32x1xf32, #tpu.memory_space<vmem>>, vector<8x1xf32>
    tpu.vector_store %arg12[%c16_49, %c0_50], %91 {strides = array<i32>} : memref<32x1xf32, #tpu.memory_space<vmem>>, vector<8x1xf32>,
    %c16_51 = arith.constant 16 : index
    %c0_52 = arith.constant 0 : index
    %93 = vector.load %arg11[%c16_51, %c0_52] : memref<32x1xf32, #tpu.memory_space<vmem>>, vector<8x1xf32>
    tpu.vector_store %arg11[%c16_51, %c0_52], %82 {strides = array<i32>} : memref<32x1xf32, #tpu.memory_space<vmem>>, vector<8x1xf32>,
    %94 = arith.truncf %87 : vector<8x8xf32> to vector<8x8xbf16>
    %cst_53 = arith.constant dense<0.000000e+00> : vector<8x8xf32>
    %95 = tpu.matmul %94, %76, %cst_53 {dimension_numbers = #tpu.dot_dimension_numbers<[1], [0], [0], [1], [0, 0, 1, 1], [], []>} : vector<8x8xbf16>, vector<8x8xbf16>, vector<8x8xf32> -> vector<8x8xf32>
    %c16_54 = arith.constant 16 : index
    %c0_55 = arith.constant 0 : index
    %96 = vector.load %arg13[%c16_54, %c0_55] : memref<32x8xf32, #tpu.memory_space<vmem>>, vector<8x8xf32>
    %97 = vector.broadcast %84 : vector<8x1xf32> to vector<8x8xf32>
    %98 = arith.mulf %97, %96 : vector<8x8xf32>
    %99 = arith.addf %98, %95 : vector<8x8xf32>
    %c16_56 = arith.constant 16 : index
    %c0_57 = arith.constant 0 : index
    %100 = vector.load %arg13[%c16_56, %c0_57] : memref<32x8xf32, #tpu.memory_space<vmem>>, vector<8x8xf32>
    tpu.vector_store %arg13[%c16_56, %c0_57], %99 {strides = array<i32>} : memref<32x8xf32, #tpu.memory_space<vmem>>, vector<8x8xf32>,
    %c0_58 = arith.constant 0 : index
    %c24 = arith.constant 24 : index
    %101 = vector.load %arg10[%c0_58, %c24] : memref<8x32xf32, #tpu.memory_space<vmem>>, vector<8x8xf32>
    %102 = arith.truncf %101 : vector<8x8xf32> to vector<8x8xbf16>
    %103 = vector.extract_strided_slice %14 {offsets = [0, 24], sizes = [8, 8], strides = [1, 1]} : vector<8x32xbf16> to vector<8x8xbf16>
    %104 = vector.extract_strided_slice %16 {offsets = [0, 24], sizes = [8, 8], strides = [1, 1]} : vector<8x32xbf16> to vector<8x8xbf16>
    %cst_59 = arith.constant dense<0.000000e+00> : vector<8x8xf32>
    %105 = tpu.matmul %102, %103, %cst_59 {dimension_numbers = #tpu.dot_dimension_numbers<[1], [1], [0], [0], [0, 0, 1, 0], [], []>} : vector<8x8xbf16>, vector<8x8xbf16>, vector<8x8xf32> -> vector<8x8xf32>
    %c24_60 = arith.constant 24 : index
    %c0_61 = arith.constant 0 : index
    %106 = vector.load %arg11[%c24_60, %c0_61] : memref<32x1xf32, #tpu.memory_space<vmem>>, vector<8x1xf32>
    %c24_62 = arith.constant 24 : index
    %c0_63 = arith.constant 0 : index
    %107 = vector.load %arg12[%c24_62, %c0_63] : memref<32x1xf32, #tpu.memory_space<vmem>>, vector<8x1xf32>
    %cst_64 = arith.constant dense<0xFF800000> : vector<8xf32>
    %108 = vector.multi_reduction <maximumf>, %105, %cst_64 [1] : vector<8x8xf32> to vector<8xf32>
    %109 = vector.shape_cast %108 : vector<8xf32> to vector<8x1xf32>
    %110 = arith.maximumf %106, %109 : vector<8x1xf32>
    %111 = arith.subf %106, %110 : vector<8x1xf32>
    %112 = math.exp %111 : vector<8x1xf32>
    %113 = vector.broadcast %110 : vector<8x1xf32> to vector<8x8xf32>
    %114 = arith.subf %105, %113 : vector<8x8xf32>
    %115 = math.exp %114 : vector<8x8xf32>
    %116 = arith.mulf %112, %107 : vector<8x1xf32>
    %cst_65 = arith.constant dense<0.000000e+00> : vector<8xf32>
    %117 = vector.multi_reduction <add>, %115, %cst_65 [1] : vector<8x8xf32> to vector<8xf32>
    %118 = vector.shape_cast %117 : vector<8xf32> to vector<8x1xf32>
    %119 = arith.addf %116, %118 : vector<8x1xf32>
    %c24_66 = arith.constant 24 : index
    %c0_67 = arith.constant 0 : index
    %120 = vector.load %arg12[%c24_66, %c0_67] : memref<32x1xf32, #tpu.memory_space<vmem>>, vector<8x1xf32>
    tpu.vector_store %arg12[%c24_66, %c0_67], %119 {strides = array<i32>} : memref<32x1xf32, #tpu.memory_space<vmem>>, vector<8x1xf32>,
    %c24_68 = arith.constant 24 : index
    %c0_69 = arith.constant 0 : index
    %121 = vector.load %arg11[%c24_68, %c0_69] : memref<32x1xf32, #tpu.memory_space<vmem>>, vector<8x1xf32>
    tpu.vector_store %arg11[%c24_68, %c0_69], %110 {strides = array<i32>} : memref<32x1xf32, #tpu.memory_space<vmem>>, vector<8x1xf32>,
    %122 = arith.truncf %115 : vector<8x8xf32> to vector<8x8xbf16>
    %cst_70 = arith.constant dense<0.000000e+00> : vector<8x8xf32>
    %123 = tpu.matmul %122, %104, %cst_70 {dimension_numbers = #tpu.dot_dimension_numbers<[1], [0], [0], [1], [0, 0, 1, 1], [], []>} : vector<8x8xbf16>, vector<8x8xbf16>, vector<8x8xf32> -> vector<8x8xf32>
    %c24_71 = arith.constant 24 : index
    %c0_72 = arith.constant 0 : index
    %124 = vector.load %arg13[%c24_71, %c0_72] : memref<32x8xf32, #tpu.memory_space<vmem>>, vector<8x8xf32>
    %125 = vector.broadcast %112 : vector<8x1xf32> to vector<8x8xf32>
    %126 = arith.mulf %125, %124 : vector<8x8xf32>
    %127 = arith.addf %126, %123 : vector<8x8xf32>
    %c24_73 = arith.constant 24 : index
    %c0_74 = arith.constant 0 : index
    %128 = vector.load %arg13[%c24_73, %c0_74] : memref<32x8xf32, #tpu.memory_space<vmem>>, vector<8x8xf32>
    tpu.vector_store %arg13[%c24_73, %c0_74], %127 {strides = array<i32>} : memref<32x8xf32, #tpu.memory_space<vmem>>, vector<8x8xf32>,
    %c0_i32_75 = arith.constant 0 : i32
    %129 = arith.cmpi eq, %arg1, %c0_i32_75 : i32
    %130 = arith.extui %129 : i1 to i32
    %c0_i32_76 = arith.constant 0 : i32
    %131 = arith.cmpi ne, %130, %c0_i32_76 : i32
    scf.if %131 {
      %c0_77 = arith.constant 0 : index
      %c0_78 = arith.constant 0 : index
      %132 = vector.load %arg12[%c0_77, %c0_78] : memref<32x1xf32, #tpu.memory_space<vmem>>, vector<32x1xf32>
      %133 = tpu.reciprocal %132 {approx = true} : vector<32x1xf32> -> vector<32x1xf32>
      %134 = arith.mulf %132, %133 : vector<32x1xf32>
      %cst_79 = arith.constant 2.000000e+00 : f32
      %135 = vector.broadcast %cst_79 : f32 to vector<32x1xf32>
      %136 = arith.subf %135, %134 : vector<32x1xf32>
      %137 = arith.mulf %133, %136 : vector<32x1xf32>
      %c0_80 = arith.constant 0 : index
      %c0_81 = arith.constant 0 : index
      %138 = vector.load %arg13[%c0_80, %c0_81] : memref<32x8xf32, #tpu.memory_space<vmem>>, vector<32x8xf32>
      %139 = vector.broadcast %137 : vector<32x1xf32> to vector<32x8xf32>
      %140 = arith.mulf %138, %139 : vector<32x8xf32>
      %c0_82 = arith.constant 0 : index
      %c0_83 = arith.constant 0 : index
      %141 = vector.load %arg13[%c0_82, %c0_83] : memref<32x8xf32, #tpu.memory_space<vmem>>, vector<32x8xf32>
      tpu.vector_store %arg13[%c0_82, %c0_83], %140 {strides = array<i32>} : memref<32x8xf32, #tpu.memory_space<vmem>>, vector<32x8xf32>,
      %cst_84 = arith.constant 0.000000e+00 : f32
      %142 = vector.broadcast %cst_84 : f32 to vector<8x32xf32>
      %c0_85 = arith.constant 0 : index
      %c0_86 = arith.constant 0 : index
      %143 = tpu.strided_load %arg13[%c0_85, %c0_86] {strides = array<i32: 4, 1>} : memref<32x8xf32, #tpu.memory_space<vmem>>, vector<8x8xf32>
      %144 = arith.truncf %143 : vector<8x8xf32> to vector<8x8xbf16>
      %c0_87 = arith.constant 0 : index
      %c0_88 = arith.constant 0 : index
      %c0_89 = arith.constant 0 : index
      %145 = vector.load %arg7[%c0_87, %c0_88, %c0_89] : memref<4x8x32xbf16, #tpu.memory_space<vmem>>, vector<1x8x32xbf16>
      %146 = vector.shape_cast %145 : vector<1x8x32xbf16> to vector<8x32xbf16>
      %cst_90 = arith.constant dense<0.000000e+00> : vector<8x32xf32>
      %147 = tpu.matmul %144, %146, %cst_90 {dimension_numbers = #tpu.dot_dimension_numbers<[1], [0], [0], [1], [0, 0, 1, 1], [], []>} : vector<8x8xbf16>, vector<8x32xbf16>, vector<8x32xf32> -> vector<8x32xf32>
      %148 = arith.addf %142, %147 : vector<8x32xf32>
      %c1 = arith.constant 1 : index
      %c0_91 = arith.constant 0 : index
      %149 = tpu.strided_load %arg13[%c1, %c0_91] {strides = array<i32: 4, 1>} : memref<32x8xf32, #tpu.memory_space<vmem>>, vector<8x8xf32>
      %150 = arith.truncf %149 : vector<8x8xf32> to vector<8x8xbf16>
      %c1_92 = arith.constant 1 : index
      %c0_93 = arith.constant 0 : index
      %c0_94 = arith.constant 0 : index
      %151 = vector.load %arg7[%c1_92, %c0_93, %c0_94] : memref<4x8x32xbf16, #tpu.memory_space<vmem>>, vector<1x8x32xbf16>
      %152 = vector.shape_cast %151 : vector<1x8x32xbf16> to vector<8x32xbf16>
      %cst_95 = arith.constant dense<0.000000e+00> : vector<8x32xf32>
      %153 = tpu.matmul %150, %152, %cst_95 {dimension_numbers = #tpu.dot_dimension_numbers<[1], [0], [0], [1], [0, 0, 1, 1], [], []>} : vector<8x8xbf16>, vector<8x32xbf16>, vector<8x32xf32> -> vector<8x32xf32>
      %154 = arith.addf %148, %153 : vector<8x32xf32>
      %c2 = arith.constant 2 : index
      %c0_96 = arith.constant 0 : index
      %155 = tpu.strided_load %arg13[%c2, %c0_96] {strides = array<i32: 4, 1>} : memref<32x8xf32, #tpu.memory_space<vmem>>, vector<8x8xf32>
      %156 = arith.truncf %155 : vector<8x8xf32> to vector<8x8xbf16>
      %c2_97 = arith.constant 2 : index
      %c0_98 = arith.constant 0 : index
      %c0_99 = arith.constant 0 : index
      %157 = vector.load %arg7[%c2_97, %c0_98, %c0_99] : memref<4x8x32xbf16, #tpu.memory_space<vmem>>, vector<1x8x32xbf16>
      %158 = vector.shape_cast %157 : vector<1x8x32xbf16> to vector<8x32xbf16>
      %cst_100 = arith.constant dense<0.000000e+00> : vector<8x32xf32>
      %159 = tpu.matmul %156, %158, %cst_100 {dimension_numbers = #tpu.dot_dimension_numbers<[1], [0], [0], [1], [0, 0, 1, 1], [], []>} : vector<8x8xbf16>, vector<8x32xbf16>, vector<8x32xf32> -> vector<8x32xf32>
      %160 = arith.addf %154, %159 : vector<8x32xf32>
      %c3 = arith.constant 3 : index
      %c0_101 = arith.constant 0 : index
      %161 = tpu.strided_load %arg13[%c3, %c0_101] {strides = array<i32: 4, 1>} : memref<32x8xf32, #tpu.memory_space<vmem>>, vector<8x8xf32>
      %162 = arith.truncf %161 : vector<8x8xf32> to vector<8x8xbf16>
      %c3_102 = arith.constant 3 : index
      %c0_103 = arith.constant 0 : index
      %c0_104 = arith.constant 0 : index
      %163 = vector.load %arg7[%c3_102, %c0_103, %c0_104] : memref<4x8x32xbf16, #tpu.memory_space<vmem>>, vector<1x8x32xbf16>
      %164 = vector.shape_cast %163 : vector<1x8x32xbf16> to vector<8x32xbf16>
      %cst_105 = arith.constant dense<0.000000e+00> : vector<8x32xf32>
      %165 = tpu.matmul %162, %164, %cst_105 {dimension_numbers = #tpu.dot_dimension_numbers<[1], [0], [0], [1], [0, 0, 1, 1], [], []>} : vector<8x8xbf16>, vector<8x32xbf16>, vector<8x32xf32> -> vector<8x32xf32>
      %166 = arith.addf %160, %165 : vector<8x32xf32>
      %c0_106 = arith.constant 0 : index
      %c0_107 = arith.constant 0 : index
      %167 = vector.load %arg8[%c0_106, %c0_107] : memref<1x32xf32, #tpu.memory_space<vmem>>, vector<1x32xf32>
      %168 = vector.broadcast %167 : vector<1x32xf32> to vector<8x32xf32>
      %169 = arith.addf %166, %168 : vector<8x32xf32>
      %c0_108 = arith.constant 0 : index
      %c0_109 = arith.constant 0 : index
      %c0_110 = arith.constant 0 : index
      %170 = vector.load %arg9[%c0_108, %c0_109, %c0_110] : memref<1x8x32xf32, #tpu.memory_space<vmem>>, vector<1x8x32xf32>
      %171 = vector.shape_cast %170 : vector<1x8x32xf32> to vector<8x32xf32>
      %172 = vector.shape_cast %169 : vector<8x32xf32> to vector<1x8x32xf32>
      tpu.vector_store %arg9[%c0_108, %c0_109, %c0_110], %172 {strides = array<i32>} : memref<1x8x32xf32, #tpu.memory_space<vmem>>, vector<1x8x32xf32>,
    } else {
    }
    return
  }
  func.func @transform_0(%arg0: i32, %arg1: i32) -> (i32, i32, i32) {
    %c0_i32 = arith.constant 0 : i32
    %c0_i32_0 = arith.constant 0 : i32
    %c0_i32_1 = arith.constant 0 : i32
    return %arg0, %c0_i32, %c0_i32_0 : i32, i32, i32
  }
  func.func @transform_1(%arg0: i32, %arg1: i32) -> (i32, i32) {
    %c0_i32 = arith.constant 0 : i32
    %c0_i32_0 = arith.constant 0 : i32
    %c0_i32_1 = arith.constant 0 : i32
    return %c0_i32, %c0_i32_0 : i32, i32
  }
  func.func @transform_2(%arg0: i32, %arg1: i32) -> (i32, i32) {
    %c0_i32 = arith.constant 0 : i32
    %c0_i32_0 = arith.constant 0 : i32
    %c0_i32_1 = arith.constant 0 : i32
    return %c0_i32, %c0_i32_0 : i32, i32
  }
  func.func @transform_3(%arg0: i32, %arg1: i32) -> (i32, i32) {
    %c0_i32 = arith.constant 0 : i32
    %c0_i32_0 = arith.constant 0 : i32
    %c0_i32_1 = arith.constant 0 : i32
    return %c0_i32, %c0_i32_0 : i32, i32
  }
  func.func @transform_4(%arg0: i32, %arg1: i32) -> (i32, i32) {
    %c0_i32 = arith.constant 0 : i32
    %c0_i32_0 = arith.constant 0 : i32
    %c0_i32_1 = arith.constant 0 : i32
    return %c0_i32, %c0_i32_0 : i32, i32
  }
  func.func @transform_5(%arg0: i32, %arg1: i32) -> (i32, i32, i32) {
    %c0_i32 = arith.constant 0 : i32
    %c0_i32_0 = arith.constant 0 : i32
    %c0_i32_1 = arith.constant 0 : i32
    %c0_i32_2 = arith.constant 0 : i32
    return %c0_i32, %c0_i32_0, %c0_i32_1 : i32, i32, i32
  }
  func.func @transform_6(%arg0: i32, %arg1: i32) -> (i32, i32) {
    %c0_i32 = arith.constant 0 : i32
    %c0_i32_0 = arith.constant 0 : i32
    %c0_i32_1 = arith.constant 0 : i32
    return %c0_i32, %c0_i32_0 : i32, i32
  }
  func.func @transform_7(%arg0: i32, %arg1: i32) -> (i32, i32, i32) {
    %c0_i32 = arith.constant 0 : i32
    %c0_i32_0 = arith.constant 0 : i32
    %c0_i32_1 = arith.constant 0 : i32
    return %arg0, %c0_i32, %c0_i32_0 : i32, i32, i32
  }
}

</mosaic_0001>

<bundles_post_ra>
// kernel: tpu_custom_call.1
= control target key start
LH: loop header
LB: loop body
LE: loop exit
PB: predicated region body
PF: predicated region fallthrough
CT: control target
= control target key end

     0   :  { %s1807_s0 = inlined_call_operand.hbm [shape: bf16[2,8,32], index: 0, kind: input, shape index: {}]   ;;  %s1808_s1 = inlined_call_operand.hbm [shape: bf16[32,32], index: 1, kind: input, shape index: {}]   ;;  %s1809_s2 = inlined_call_operand.vmem [shape: f32[1,32], index: 2, kind: input, shape index: {}]   ;;  %s1810_s3 = inlined_call_operand.hbm [shape: bf16[32,64], index: 3, kind: input, shape index: {}]   ;;  %s1811_s4 = inlined_call_operand.vmem [shape: f32[1,64], index: 4, kind: input, shape index: {}]   ;;  %s1812_s5 = inlined_call_operand.hbm [shape: bf16[4,8,32], index: 5, kind: input, shape index: {}]   ;;  %s1813_s6 = inlined_call_operand.vmem [shape: f32[1,32], index: 6, kind: input, shape index: {}]   ;;  %s1814_s7 = inlined_call_operand.hbm [shape: f32[2,8,32], index: 7, kind: output, shape index: {}]  }
   0x1   :  { %1815 = sst [smem:[#allocation19_spill]] %s1808_s1 }
   0x2   :  { %1816 = sst [smem:[#allocation20_spill]] %s1810_s3 }
   0x3   :  { %12 = vsyncpa [#allocation7], 0 }
   0x4   :  { %14 = vsyncpa [#allocation7 + $0x1], 0 }
   0x5   :  { %15 = vsyncpa [#allocation10], 0 }
   0x6   :  { %16 = vsyncpa [#allocation13], 0 }
   0x7   :  { %17 = vsyncpa [#allocation8], 0 }
   0x8   :  { %19 = vsyncpa [#allocation8 + $0x1], 0  ;;  %s1522_s24 = smov 0   ;;  %s1524_s25 = smov 0  }
   0x9   :  { %s1526_s26 = smov 0   ;;  %s1528_s27 = smov 0  }
   0xa   :  { %s1530_s28 = smov 0   ;;  %s1532_s29 = smov 0  }
   0xb LB: > { %s1067_s30 = sadd.s32 4294967295, %s1465_s29   ;;  %p1069_p0 = scmp.ge.s32.totalorder %s1465_s29, 1  ;;  %s1465_s29 = sphi %s1532_s29, %s25_s29   ;;  %s1461_s28 = sphi %s1530_s28, %s1830_s28   ;;  %s1457_s27 = sphi %s1528_s27, %s1829_s27   ;;  %s1453_s26 = sphi %s1526_s26, %s1828_s26   ;;  %s1449_s25 = sphi %s1524_s25, %s1827_s25   ;;  %s1445_s24 = sphi %s1522_s24, %s1826_s24  }
   0xc   : > { %p1556_p1 = scmp.eq.s32.totalorder %s1067_s30, 0  ;;  %p220_p2 = scmp.lt.s32.totalorder %s1465_s29, 3 }
   0xd   : > { %s1818_s1 = sld [smem:[#allocation19_spill]]  ;;  %s1467_s13 = smov [#allocation9]  }
   0xe   : > { %p1564_p3 = pnand %p1069_p0, %p220_p2  ;;  %s233_s14 = sshll.u32 %s1467_s13, 4  ;;  %s234_s14 = int_to_ptr.vmem [resolvable:$true] %s233_s14 }
   0xf   : > { %p1073_p6 = scmp.ge.s32.totalorder %s1465_s29, 2  ;;  %s1821_s3 = sld [smem:[#allocation20_spill]] }
  0x10   : > { %p1136_p4 = pneg %p1564_p3  ;;  %s1468_s19 = smov 64  }
  0x11   : > { %s1469_s20 = smov 4   ;;  %s1470_s21 = smov [#allocation11]  }
  0x12   : > { %p1572_p5 = pnand %p1136_p4, %p1556_p1  ;;  %s250_s22 = sshll.u32 %s1470_s21, 4  ;;  %s251_s22 = int_to_ptr.vmem [resolvable:$true] %s250_s22 }
  0x13   : > { %s231_s11 = sshll.u32 %s1818_s1, 4  ;;  %s265_s10 = sshll.u32 %s1812_s5, 4  ;;  %s232_s11 = int_to_ptr.hbm [resolvable:$true] %s231_s11  ;;  %s266_s10 = int_to_ptr.hbm [resolvable:$true] %s265_s10 }
  0x14   : > { %1139 = dma.hbm_to_vmem [thread:$0]  (!%p1572_p5), %s232_s11, 256, %s234_s14, [#allocation10], %s1468_s19, %s1468_s19, %s1469_s20  }
  0x15   : > { %s248_s18 = sshll.u32 %s1821_s3, 4  ;;  %s1471_s13 = smov [#allocation12]   ;;  %s249_s18 = int_to_ptr.hbm [resolvable:$true] %s248_s18 }
  0x16   : > { %1142 = dma.hbm_to_vmem [thread:$0]  (!%p1572_p5), %s249_s18, 256, %s251_s22, [#allocation10], %s1468_s19, %s1468_s19, %s1469_s20  }
  0x17   : > { %s267_s16 = sshll.u32 %s1471_s13, 4  ;;  %s1068_s11 = sadd.s32 4294967294, %s1465_s29   ;;  %s268_s16 = int_to_ptr.vmem [resolvable:$true] %s267_s16 }
  0x18   : > { %1145 = dma.hbm_to_vmem [thread:$0]  (!%p1572_p5), %s266_s10, 256, %s268_s16, [#allocation13], %s1468_s19, %s1468_s19, %s1469_s20  }
  0x19   : > { %s37_s14 = sadd.s32 1, %s1461_s28  ;;  %s44_s17 = sadd.s32 1, %s1453_s26 }
  0x1a   : > { %p39_p7 = scmp.ge.s32.totalorder %s37_s14, 2  ;;  %p51_p8 = scmp.ne.s32.totalorder %s1453_s26, %s1449_s25 }
  0x1b   : > { %p52_p9 = scmp.eq.s32.totalorder %s1465_s29, 0  ;;  %p57_p10 = scmp.ne.s32.totalorder %s1449_s25, %s1445_s24 }
  0x1c   : > { %s1832_s14 = smov (%p39_p7, %s37_s14), 0  ;;  %p207_p13 = scmp.eq.s32.totalorder %s1067_s30, 1 }
  0x1d   : > { %p1599_p11 = por %p52_p9, %p51_p8  ;;  %p1605_p12 = por %p1556_p1, %p57_p10 }
  0x1e   : > { %s41_s19 = ssub.s32 %s1461_s28, %s1832_s14  ;;  %p213_p2 = scmp.eq.s32.totalorder %s1068_s11, 1 }
  0x1f   : > { %p42_p0 = scmp.eq.s32.totalorder %s41_s19, 0  ;;  %p1613_p4 = por %p207_p13, %p51_p8 }
  0x20   : > { %p1157_p5 = scmp.lt.s32.totalorder %s1465_s29, 2  ;;  %p1621_p7 = por %p213_p2, %p57_p10 }
  0x21   : > { %s1619_s21 = scalar_select %p42_p0, %s1453_s26, %s44_s17  }
  0x22   : > { %s284_s23 = sand.u32 1, %s1453_s26   ;;  %s1075_s10 = sshll.u32 %s1461_s28, 2 }
  0x23   : > { %s1074_s9 = sshll.u32 %s284_s23, 2  ;;  %s292_s30 = scalar_lea.hbm %s1807_s0, %s1075_s10 }
  0x24   : > { %s288_s19 = scalar_lea.vmem [#allocation6], %s1074_s9  ;;  %s294_s1 = sshll.u32 %s292_s30, 4  ;;  %s295_s1 = int_to_ptr.hbm [resolvable:$true] %s294_s1 }
  0x25   : > { %s296_s11 = sshll.u32 %s288_s19, 4  ;;  %p1147_p8 = pnand %p1157_p5, %p1599_p11  ;;  %s297_s11 = int_to_ptr.vmem [resolvable:$true] %s296_s11 }
  0x26   : > { %s285_s17 = scalar_lea.sflag [#allocation7], %s284_s23  ;;  %305 = sbr.rel (%p1564_p3) target bundleno = 1392 (0x570), region = 48 }
  0x27   : > { %1149 = dma.hbm_to_vmem [thread:$0]  (!%p1147_p8), %s295_s1, 64, %s297_s11, %s285_s17  }
  0x28   : > { %s1635_s3 = sand.u32 (!%p1564_p3), 1, %s1449_s25  }
  0x29   : > { %s1077_s13 = sshll.u32 (!%p1564_p3), %s1635_s3, 2  ;;  %s308_s10 = scalar_lea.sflag (!%p1564_p3), [#allocation7], %s1635_s3 }
  0x2a   : > { %s311_s9 = scalar_lea.vmem (!%p1564_p3), [#allocation6], %s1077_s13 }
  0x2b   : > { %1428 = dma.done.wait (%p1605_p12), %s308_s10, 64  }
  0x2c   : > { %1430 = vsyncadd (%p1605_p12), %s308_s10, 4294967232 }
  0x2d   : > { %1432 = dma.done.wait (%p1556_p1), [#allocation10], 512  }
  0x2e   : > { %1434 = vsyncadd (%p1556_p1), [#allocation10], 4294966784 }
  0x2f   : > { %1436 = dma.done.wait (%p1556_p1), [#allocation13], 256  }
  0x30   : > { %1438 = vsyncadd (%p1556_p1), [#allocation13], 4294967040  ;;  %v1117_v0 = vld [vmem:[#allocation9 + $0x8] sm:$0xff]  ;;  %v1119_v1 = vld [vmem:[#allocation11 + $0x8] sm:$0xff]  ;;  %vm384_vm0 = vcmask 261120   ;;  %vm411_vm1 = vcmask 64512  }
  0x31   : > { %v1116_v2 = vld [vmem:[#allocation9] sm:$0xff]  ;;  %394 = vmatpush.bf16.msra.mxu0 %v1117_v0  ;;  %452 = vmatpush.bf16.msra.mxu1 %v1119_v1  ;;  %v1118_v3 = vld [vmem:[#allocation11] sm:$0xff]  ;;  %v363_v4 = vld [vmem:[%s311_s9] sm:$0xf]  ;;  %s1472_s15 = smov 96   ;;  %s1473_s23 = smov 120  }
  0x32   : > { %v421_v5 = vld [vmem:[%s311_s9] sm:$0xf]  ;;  %v1228_v6 = vld [vmem:[%s1809_s2] ss:$0 sm:$0xff]  ;;  %s1474_s16 = smov 112   ;;  %s1475_s30 = smov 104  }
  0x33   : > { %v1229_v7 = vld [vmem:[%s1811_s4] ss:$0 sm:$0xff]  ;;  %vm516_vm2 = vcmask 1043456   ;;  %vm402_vm3 = vcmask 7168   ;;  %v1476_v31 = vmov -inf   ;;  %v1477_v32 = vmov 0  }
  0x34   : > { %403 = vst.msk [vmem:[#allocation3] sm:$0xff] %vm402_vm3, %v1476_v31  ;;  %1225 = vset.pattern.permute.xlu0 %v1477_v32  ;;  %1226 = vset.pattern.permute.xlu2 %v1477_v32  ;;  %v1478_v33 = vmov 0.0   ;;  %s1479_s19 = smov 88   ;;  %s1480_s11 = smov 72  }
  0x35   : > { %395 = vmatpush.bf16.msra.mxu0 %v1116_v2  ;;  %453 = vmatpush.bf16.msra.mxu1 %v1118_v3  ;;  %404 = vst.msk [vmem:[#allocation3 + $0x8] sm:$0xff] %vm402_vm3, %v1476_v31  ;;  %s1481_s17 = smov 80   ;;  %s1081_s13 = sshll.u32 %s1635_s3, 3 }
  0x36   : > { %405 = vst.msk [vmem:[#allocation3 + $0x10] sm:$0xff] %vm402_vm3, %v1476_v31  ;;  %1227 = vset.pattern.permute.xlu1 %v1477_v32  ;;  %s1113_s10 = sshll.u32 %s1457_s27, 3  ;;  %s943_s27 = scalar_lea.sflag [#allocation8], %s1635_s3 }
  0x37   : > { %406 = vst.msk [vmem:[#allocation3 + $0x18] sm:$0xff] %vm402_vm3, %v1476_v31  ;;  %s953_s12 = scalar_lea.hbm %s1814_s7, %s1113_s10 }
  0x38   : > { %1090 = vmatmul.msk.bf16.vlgmr.msra.gmra.mxu0 %vm384_vm0, %v363_v4  ;;  %1099 = vmatmul.msk.bf16.vlgmr.msra.gmra.mxu1 %vm384_vm0, %v421_v5  ;;  %407 = vst.msk [vmem:[#allocation4] sm:$0xff] %vm402_vm3, %v1478_v33 }
  0x39   : > { %408 = vst.msk [vmem:[#allocation4 + $0x8] sm:$0xff] %vm402_vm3, %v1478_v33 }
  0x3a   : > { %409 = vst.msk [vmem:[#allocation4 + $0x10] sm:$0xff] %vm402_vm3, %v1478_v33 }
  0x3b   : > { %410 = vst.msk [vmem:[#allocation4 + $0x18] sm:$0xff] %vm402_vm3, %v1478_v33  ;;  %v1691_v37 = vld [vmem:[#allocation3] sm:$0xff] }
  0x3c   : > { %412 = vst.msk [vmem:[#allocation5] sm:$0xff] %vm411_vm1, %v1478_v33  ;;  %v568_v0 = vld [vmem:[#allocation3 + $0x8] sm:$0xff] }
  0x3d   : > { %413 = vst.msk [vmem:[#allocation5 + $0x8] sm:$0xff] %vm411_vm1, %v1478_v33  ;;  %v1703_v43 = vld [vmem:[#allocation3 + $0x10] sm:$0xff] }
  0x3e   : > { %414 = vst.msk [vmem:[#allocation5 + $0x10] sm:$0xff] %vm411_vm1, %v1478_v33  ;;  %v730_v4 = vld [vmem:[#allocation3 + $0x18] sm:$0xff] }
  0x3f   : > { %415 = vst.msk [vmem:[#allocation5 + $0x18] sm:$0xff] %vm411_vm1, %v1478_v33 }
  0xb5   : > { %v397_v8 = vpop.f32.mrf.mxu0  ;;  %v455_v9 = vpop.f32.mrf.mxu1 }
  0xb6   : > { %v398_v10 = vadd.f32 %v1228_v6, %v397_v8  ;;  %v456_v11 = vadd.f32 %v1229_v7, %v455_v9 }
  0xb8   : > { %401 = vst.msk [vmem:[#allocation2] sm:$0xff] %vm384_vm0, %v398_v10  ;;  %v459_v12 = vpack.c.bf16 %v456_v11, %v456_v11 }
  0xba   : > { %v509_v13 = vunpack.c.l.b16 %v459_v12  ;;  %v467_v14 = vsel %vm411_vm1, %v459_v12, 0 }
  0xbb   : > { %476 = vmatpush.bf16.xpose.msra.mxu2 %v467_v14 }
  0xbc   : > { %v1661_v15 = vpack.c.b16 %v509_v13, %v509_v13 }
  0xbd   : > { %v399_v16 = vpop.f32.mrf.mxu0  ;;  %v457_v17 = vpop.f32.mrf.mxu1 }
  0xbe   : > { %511 = vrot.lane.b32.xlu1 %v1661_v15, %s1472_s15  ;;  %s357_s15 = scalar_lea.vmem [#allocation14], %s1081_s13  ;;  %s1395_s13 = scalar_lea.hbm %s1814_s7, 16 }
  0xbf   : > { %v542_v18 = vld [vmem:[#allocation2] sm:$0xff] }
  0xc0   : > { %v543_v19 = vpack.c.bf16 %v542_v18, %v542_v18 }
  0xc2   : > { %545 = vrot.lane.b32.xlu2 %v543_v19, %s1473_s23  ;;  %1100 = vmatmul.msk.bf16.vlgmr.msra.gmra.mxu2 %vm411_vm1, %v543_v19 }
  0xc6   : > { %547 = vrot.lane.b32.xlu1 %v1661_v15, %s1473_s23  ;;  %s955_s23 = sshll.u32 %s357_s15, 4  ;;  %s956_s23 = int_to_ptr.vmem [resolvable:$true] %s955_s23 }
  0xca   : > { %628 = vrot.lane.b32.xlu2 %v1661_v15, %s1474_s16 }
  0xce   : > { %709 = vrot.lane.b32.xlu1 %v1661_v15, %s1475_s30 }
  0xd2   : > { %626 = vrot.lane.b32.xlu2 %v543_v19, %s1474_s16  ;;  %s957_s16 = sshll.u32 %s953_s12, 4  ;;  %s958_s16 = int_to_ptr.hbm [resolvable:$true] %s957_s16 }
  0xd6   : > { %707 = vrot.lane.b32.xlu1 %v543_v19, %s1475_s30  ;;  %s1389_s30 = sshra.s32 %s958_s16, 4  ;;  %s1390_s30 = int_to_ptr.hbm [resolvable:$true] %s1389_s30 }
  0xd7   : > { %p1396_p10 = scmp.lt.s32.totalorder %s1390_s30, %s1814_s7 }
 0x11c   : > { %v1668_v20 = vpop.permute.xlu2 %545 }
 0x124   : > { %v629_v21 = vpop.permute.xlu2 %628 }
 0x125   : > { %v634_v22 = vsel %vm411_vm1, %v629_v21, 0 }
 0x126   : > { %643 = vmatpush.bf16.xpose.msrb.mxu1 %v634_v22 }
 0x12c   : > { %v627_v23 = vpop.permute.xlu2 %626 }
 0x12d   : > { %1104 = vmatmul.msk.bf16.vlgmr.msrb.gmra.mxu1 %vm411_vm1, %v627_v23 }
 0x130   : > { %v512_v24 = vpop.permute.xlu1 %511 }
 0x131   : > { %v518_v25 = vsel %vm516_vm2, %v512_v24, 0 }
 0x132   : > { %527 = vmatpush.bf16.msra.mxu3 %v518_v25 }
 0x138   : > { %v548_v26 = vpop.permute.xlu1 %547 }
 0x139   : > { %v553_v27 = vsel %vm411_vm1, %v548_v26, 0 }
 0x13a   : > { %562 = vmatpush.bf16.xpose.msrb.mxu3 %v553_v27 }
 0x140   : > { %v710_v41 = vpop.permute.xlu1 %709 }
 0x141   : > { %v715_v53 = vsel %vm411_vm1, %v710_v41, 0 }
 0x145   : > { %v478_v28 = vpop.f32.mrf.mxu2 }
 0x146   : > { %v484_v29 = vsel %vm411_vm1, %v478_v28, -inf }
 0x147   : > { %485 = vmax.xlane.f32.xlu0 %v484_v29 }
 0x148   : > { %v708_v42 = vpop.permute.xlu1 %707 }
 0x14d   : > { %v480_v30 = vpop.f32.mrf.mxu2 }
 0x1aa   : > { %v1687_v34 = vpop.f32.mrf.mxu1 }
 0x1ab   : > { %v651_v35 = vsel %vm411_vm1, %v1687_v34, -inf }
 0x1ac   : > { %652 = vmax.xlane.f32.xlu1 %v651_v35 }
 0x1b2   : > { %v647_v36 = vpop.f32.mrf.mxu1 }
 0x1ba   : > { %v486_v38 = vpop.xlane.xlu0 %485 }
 0x1bb   : > { %v1694_v39 = vmax.f32 %v1691_v37, %v486_v38  ;;  %v483_v38 = vld [vmem:[#allocation4] sm:$0xff] }
 0x1bd   : > { %v488_v40 = vsub.f32 %v1691_v37, %v1694_v39  ;;  %506 = vst.msk [vmem:[#allocation3] sm:$0xff] %vm402_vm3, %v1694_v39  ;;  %493 = vperm.xlu0 %1225, %v1694_v39  }
 0x1bf   : > { %v489_v23 = vmul.f32 1.442695, %v488_v40 }
 0x1c5   : > { %593 = vrot.lane.b32.xlu1 %v1661_v15, %s1479_s19  ;;  %s1391_s19 = scalar_lea.hbm %s1390_s30, 8 }
 0x1c6   : > { %p1392_p1 = scmp.ne.s32.totalorder %s1390_s30, %s1391_s19  ;;  %p1397_p11 = scmp.lt.s32.totalorder %s1395_s13, %s1391_s19 }
 0x1c8   : > { %p1393_p3 = pnand %p1392_p1, %p1613_p4  ;;  %p1398_p12 = por %p1397_p11, %p1396_p10 }
 0x1ca   : > { %p1394_p9 = pneg %p1393_p3 }
 0x1cc   : > { %p1399_p13 = pnand %p1398_p12, %p1394_p9 }
 0x1cd   : > { %755 = vrot.lane.b32.xlu1 %v1661_v15, %s1480_s11 }
 0x21f   : > { %v653_v44 = vpop.xlane.xlu1 %652 }
 0x220   : > { %v1706_v45 = vmax.f32 %v1703_v43, %v653_v44 }
 0x222   : > { %672 = vst.msk [vmem:[#allocation3 + $0x10] sm:$0xff] %vm402_vm3, %v1706_v45  ;;  %v655_v35 = vsub.f32 %v1703_v43, %v1706_v45 }
 0x224   : > { %v656_v36 = vmul.f32 1.442695, %v655_v35 }
 0x22f   : > { %v494_v46 = vpop.permute.xlu0 %493 }
 0x230   : > { %v496_v47 = vsub.f32 %v478_v28, %v494_v46 }
 0x232   : > { %v497_v48 = vmul.f32 1.442695, %v496_v47 }
 0x234   : > { %1231 = vpow2.f32 %v497_v48 }
 0x237   : > { %v594_v49 = vpop.permute.xlu1 %593 }
 0x238   : > { %v599_v50 = vsel %vm516_vm2, %v594_v49, 0  ;;  %v569_v49 = vld [vmem:[#allocation4 + $0x8] sm:$0xff] }
 0x239   : > { %608 = vmatpush.bf16.msrb.mxu0 %v599_v50 }
 0x23a   : > { %v1232_v51 = vpop.eup %1231 }
 0x23b   : > { %v507_v52 = vpack.c.bf16 %v1232_v51, %v1232_v51  ;;  %v500_v8 = vsel %vm411_vm1, %v1232_v51, 0.0  ;;  %v650_v51 = vld [vmem:[#allocation4 + $0x10] sm:$0xff] }
 0x23d   : > { %1101 = vmatmul.msk.bf16.vlgmr.msra.gmra.mxu3 %vm411_vm1, %v507_v52 }
 0x23e   : > { %724 = vmatpush.bf16.xpose.msra.mxu3 %v715_v53 }
 0x23f   : > { %v756_v54 = vpop.permute.xlu1 %755 }
 0x240   : > { %v761_v55 = vsel %vm516_vm2, %v756_v54, 0 }
 0x241   : > { %770 = vmatpush.bf16.msra.mxu0 %v761_v55 }
 0x24d   : > { %1102 = vmatmul.msk.bf16.vlgmr.msrb.gmra.mxu3 %vm411_vm1, %v1668_v20 }
 0x25d   : > { %1106 = vmatmul.msk.bf16.vlgmr.msra.gmra.mxu3 %vm411_vm1, %v708_v42 }
 0x2c0   : > { %v1717_v56 = vpop.f32.mrf.mxu3 }
 0x2c8   : > { %v531_v57 = vpop.f32.mrf.mxu3 }
 0x2d0   : > { %v564_v58 = vpop.f32.mrf.mxu3 }
 0x2d1   : > { %v570_v59 = vsel %vm411_vm1, %v564_v58, -inf }
 0x2d2   : > { %571 = vmax.xlane.f32.xlu2 %v570_v59 }
 0x2d8   : > { %v566_v60 = vpop.f32.mrf.mxu3 }
 0x2e0   : > { %v726_v61 = vpop.f32.mrf.mxu3 }
 0x2e1   : > { %v732_v62 = vsel %vm411_vm1, %v726_v61, -inf }
 0x2e2   : > { %733 = vmax.xlane.f32.xlu0 %v732_v62 }
 0x2e8   : > { %v728_v63 = vpop.f32.mrf.mxu3 }
 0x345   : > { %v572_v1 = vpop.xlane.xlu2 %571 }
 0x346   : > { %v573_v2 = vmax.f32 %v568_v0, %v572_v1 }
 0x348   : > { %v574_v3 = vsub.f32 %v568_v0, %v573_v2  ;;  %591 = vst.msk [vmem:[#allocation3 + $0x8] sm:$0xff] %vm402_vm3, %v573_v2  ;;  %579 = vperm.xlu2 %1226, %v573_v2   ;;  %v533_v0 = vld [vmem:[#allocation5] sm:$0xff] }
 0x34a   : > { %v575_v24 = vmul.f32 1.442695, %v574_v3 }
 0x350   : > { %660 = vperm.xlu2 %1226, %v1706_v45  }
 0x355   : > { %v734_v5 = vpop.xlane.xlu0 %733 }
 0x356   : > { %v735_v6 = vmax.f32 %v730_v4, %v734_v5  ;;  %v614_v5 = vld [vmem:[#allocation5 + $0x8] sm:$0xff] }
 0x358   : > { %v736_v7 = vsub.f32 %v730_v4, %v735_v6  ;;  %753 = vst.msk [vmem:[#allocation3 + $0x18] sm:$0xff] %vm402_vm3, %v735_v6  ;;  %674 = vrot.lane.b32.xlu2 %v1661_v15, %s1481_s17  ;;  %741 = vperm.xlu0 %1225, %v735_v6  }
 0x35a   : > { %v737_v26 = vmul.f32 1.442695, %v736_v7 }
 0x381   : > { %501 = vadd.xlane.f32.xlu2 %v500_v8 }
 0x3a2   : > { %v580_v9 = vpop.permute.xlu2 %579 }
 0x3a3   : > { %v582_v10 = vsub.f32 %v564_v58, %v580_v9 }
 0x3a5   : > { %v583_v11 = vmul.f32 1.442695, %v582_v10 }
 0x3a7   : > { %1233 = vpow2.f32 %v583_v11 }
 0x3aa   : > { %v661_v12 = vpop.permute.xlu2 %660 }
 0x3ab   : > { %v663_v13 = vsub.f32 %v1687_v34, %v661_v12 }
 0x3ad   : > { %v1234_v14 = vpop.eup %1233  ;;  %v664_v16 = vmul.f32 1.442695, %v663_v13 }
 0x3ae   : > { %v586_v17 = vsel %vm411_vm1, %v1234_v14, 0.0  ;;  %v592_v18 = vpack.c.bf16 %v1234_v14, %v1234_v14  ;;  %v731_v14 = vld [vmem:[#allocation4 + $0x18] sm:$0xff] }
 0x3af   : > { %1235 = vpow2.f32 %v664_v16  ;;  %587 = vadd.xlane.f32.xlu1 %v586_v17 }
 0x3b0   : > { %1103 = vmatmul.msk.bf16.vlgmr.msrb.gmra.mxu0 %vm411_vm1, %v592_v18  ;;  %1237 = vpow2.f32 %v489_v23 }
 0x3b1   : > { %1239 = vpow2.f32 %v575_v24 }
 0x3b2   : > { %v675_v15 = vpop.permute.xlu2 %674  ;;  %1241 = vpow2.f32 %v737_v26 }
 0x3b3   : > { %v680_v19 = vsel %vm516_vm2, %v675_v15, 0  ;;  %v695_v15 = vld [vmem:[#allocation5 + $0x10] sm:$0xff] }
 0x3b4   : > { %689 = vmatpush.bf16.msrb.mxu2 %v680_v19 }
 0x3b5   : > { %v1236_v20 = vpop.eup %1235 }
 0x3b6   : > { %v667_v21 = vsel %vm411_vm1, %v1236_v20, 0.0  ;;  %v673_v22 = vpack.c.bf16 %v1236_v20, %v1236_v20  ;;  %v1238_v25 = vpop.eup %1237 }
 0x3b7   : > { %668 = vadd.xlane.f32.xlu0 %v667_v21  ;;  %v1240_v27 = vpop.eup %1239  ;;  %v499_v39 = vmul.f32 %v1238_v25, %v483_v38  ;;  %v842_v38 = vld [vmem:[#allocation12] sm:$0xf] }
 0x3b8   : > { %1105 = vmatmul.msk.bf16.vlgmr.msrb.gmra.mxu2 %vm411_vm1, %v673_v22  ;;  %v1735_v31 = vpop.eup %1241  ;;  %v585_v50 = vmul.f32 %v1240_v27, %v569_v49 }
 0x3b9   : > { %v747_v16 = vmul.f32 %v1735_v31, %v731_v14 }
 0x3c8   : > { %536 = vperm.xlu1 %1227, %v1238_v25  }
 0x3ca   : > { %v742_v28 = vpop.permute.xlu0 %741 }
 0x3cb   : > { %v744_v29 = vsub.f32 %v726_v61, %v742_v28  ;;  %617 = vperm.xlu0 %1225, %v1240_v27  }
 0x3cd   : > { %v745_v30 = vmul.f32 1.442695, %v744_v29 }
 0x3cf   : > { %1243 = vpow2.f32 %v745_v30 }
 0x3d0   : > { %1245 = vpow2.f32 %v656_v36 }
 0x3d3   : > { %779 = vperm.xlu0 %1225, %v1735_v31  }
 0x3d5   : > { %v1244_v32 = vpop.eup %1243 }
 0x3d6   : > { %v754_v33 = vpack.c.bf16 %v1244_v32, %v1244_v32  ;;  %v748_v34 = vsel %vm411_vm1, %v1244_v32, 0.0  ;;  %v1246_v37 = vpop.eup %1245 }
 0x3d7   : > { %749 = vadd.xlane.f32.xlu2 %v748_v34  ;;  %v666_v52 = vmul.f32 %v1246_v37, %v650_v51 }
 0x3d8   : > { %1107 = vmatmul.msk.bf16.vlgmr.msra.gmra.mxu0 %vm411_vm1, %v754_v33 }
 0x3ef   : > { %698 = vperm.xlu2 %1226, %v1246_v37  }
 0x3f4   : > { %v502_v40 = vpop.xlane.xlu2 %501 }
 0x3f5   : > { %v503_v41 = vadd.f32 %v502_v40, %v499_v39  ;;  %v890_v39 = vld [vmem:[#allocation12 + $0x8] sm:$0xf]  ;;  %v871_v40 = vsel %vm516_vm2, %v842_v38, 0 }
 0x3f6   : > { %880 = vmatpush.bf16.msra.mxu2 %v871_v40 }
 0x3f7   : > { %505 = vst.msk [vmem:[#allocation4] sm:$0xff] %vm402_vm3, %v503_v41  ;;  %v895_v41 = vsel %vm516_vm2, %v890_v39, 0 }
 0x3f8   : > { %904 = vmatpush.bf16.msrb.mxu3 %v895_v41 }
 0x3fe   : > { %v788_v42 = vld [vmem:[#allocation4] sm:$0xff] }
 0x3ff   : > { %1247 = vrcp.f32 %v788_v42 }
 0x405   : > { %v1248_v44 = vpop.eup %1247 }
 0x406   : > { %v796_v46 = vmul.f32 %v1248_v44, %v788_v42 }
 0x408   : > { %v800_v47 = vsub.f32 2.0, %v796_v46 }
 0x40a   : > { %v804_v48 = vmul.f32 %v1248_v44, %v800_v47  ;;  %v847_v47 = vld [vmem:[#allocation12 + $0x4] sm:$0xf] }
 0x40b   : > { %v852_v49 = vsel %vm516_vm2, %v847_v47, 0 }
 0x40c   : > { %814 = vperm.xlu1 %1227, %v804_v48   ;;  %v915_v48 = vld [vmem:[#allocation12 + $0xc] sm:$0xf]  ;;  %861 = vmatpush.bf16.msra.mxu1 %v852_v49 }
 0x422   : > { %v588_v43 = vpop.xlane.xlu1 %587 }
 0x423   : > { %v589_v45 = vadd.f32 %v588_v43, %v585_v50  ;;  %v920_v50 = vsel %vm516_vm2, %v915_v48, 0 }
 0x424   : > { %929 = vmatpush.bf16.msrb.mxu0 %v920_v50 }
 0x425   : > { %590 = vst.msk [vmem:[#allocation4 + $0x8] sm:$0xff] %vm402_vm3, %v589_v45 }
 0x42a   : > { %v669_v53 = vpop.xlane.xlu0 %668 }
 0x42b   : > { %v670_v54 = vadd.f32 %v669_v53, %v666_v52 }
 0x42c   : > { %v789_v55 = vld [vmem:[#allocation4 + $0x8] sm:$0xff] }
 0x42d   : > { %671 = vst.msk [vmem:[#allocation4 + $0x10] sm:$0xff] %vm402_vm3, %v670_v54  ;;  %v610_v57 = vpop.f32.mrf.mxu0  ;;  %1249 = vrcp.f32 %v789_v55 }
 0x433   : > { %v1250_v58 = vpop.eup %1249 }
 0x434   : > { %v797_v59 = vmul.f32 %v1250_v58, %v789_v55  ;;  %v790_v60 = vld [vmem:[#allocation4 + $0x10] sm:$0xff] }
 0x435   : > { %v612_v61 = vpop.f32.mrf.mxu0  ;;  %1251 = vrcp.f32 %v790_v60 }
 0x436   : > { %v801_v62 = vsub.f32 2.0, %v797_v59 }
 0x438   : > { %v805_v63 = vmul.f32 %v1250_v58, %v801_v62 }
 0x43a   : > { %819 = vperm.xlu2 %1226, %v805_v63   ;;  %v537_v1 = vpop.permute.xlu1 %536 }
 0x43b   : > { %v1252_v2 = vpop.eup %1251  ;;  %v539_v3 = vmul.f32 %v537_v1, %v533_v0  ;;  %v691_v4 = vpop.f32.mrf.mxu2 }
 0x43c   : > { %v798_v6 = vmul.f32 %v1252_v2, %v790_v60 }
 0x43d   : > { %v540_v7 = vadd.f32 %v539_v3, %v1717_v56  ;;  %v618_v8 = vpop.permute.xlu0 %617  ;;  %v776_v56 = vld [vmem:[#allocation5 + $0x18] sm:$0xff] }
 0x43e   : > { %v620_v9 = vmul.f32 %v618_v8, %v614_v5  ;;  %v802_v10 = vsub.f32 2.0, %v798_v6 }
 0x43f   : > { %541 = vst.msk [vmem:[#allocation5] sm:$0xff] %vm411_vm1, %v540_v7 }
 0x440   : > { %v621_v11 = vadd.f32 %v620_v9, %v610_v57  ;;  %v806_v12 = vmul.f32 %v1252_v2, %v802_v10 }
 0x442   : > { %622 = vst.msk [vmem:[#allocation5 + $0x8] sm:$0xff] %vm411_vm1, %v621_v11  ;;  %824 = vperm.xlu0 %1225, %v806_v12  }
 0x443   : > { %v693_v13 = vpop.f32.mrf.mxu2 }
 0x445   : > { %v780_v19 = vpop.permute.xlu0 %779 }
 0x446   : > { %v782_v22 = vmul.f32 %v780_v19, %v776_v56  ;;  %v808_v32 = vld [vmem:[#allocation5] sm:$0xff] }
 0x449   : > { %v809_v35 = vld [vmem:[#allocation5 + $0x8] sm:$0xff] }
 0x44a   : > { %v750_v17 = vpop.xlane.xlu2 %749 }
 0x44b   : > { %v751_v18 = vadd.f32 %v750_v17, %v747_v16 }
 0x44d   : > { %752 = vst.msk [vmem:[#allocation4 + $0x18] sm:$0xff] %vm402_vm3, %v751_v18 }
 0x452   : > { %v699_v20 = vpop.permute.xlu2 %698 }
 0x453   : > { %v701_v21 = vmul.f32 %v699_v20, %v695_v15 }
 0x454   : > { %v791_v23 = vld [vmem:[#allocation4 + $0x18] sm:$0xff] }
 0x455   : > { %v702_v24 = vadd.f32 %v701_v21, %v691_v4  ;;  %v772_v25 = vpop.f32.mrf.mxu0  ;;  %1253 = vrcp.f32 %v791_v23  ;;  %v1230_v4 = vld [vmem:[%s1813_s6] ss:$0 sm:$0xff] }
 0x456   : > { %v783_v26 = vadd.f32 %v782_v22, %v772_v25 }
 0x457   : > { %703 = vst.msk [vmem:[#allocation5 + $0x10] sm:$0xff] %vm411_vm1, %v702_v24 }
 0x458   : > { %784 = vst.msk [vmem:[#allocation5 + $0x18] sm:$0xff] %vm411_vm1, %v783_v26 }
 0x45b   : > { %v1254_v27 = vpop.eup %1253 }
 0x45c   : > { %v799_v28 = vmul.f32 %v1254_v27, %v791_v23 }
 0x45d   : > { %v774_v29 = vpop.f32.mrf.mxu0 }
 0x45e   : > { %v803_v30 = vsub.f32 2.0, %v799_v28  ;;  %v810_v44 = vld [vmem:[#allocation5 + $0x10] sm:$0xff] }
 0x45f   : > { %v811_v43 = vld [vmem:[#allocation5 + $0x18] sm:$0xff] }
 0x460   : > { %v807_v31 = vmul.f32 %v1254_v27, %v803_v30 }
 0x462   : > { %829 = vperm.xlu1 %1227, %v807_v31  }
 0x47e   : > { %v815_v33 = vpop.permute.xlu1 %814 }
 0x47f   : > { %v832_v34 = vmul.f32 %v815_v33, %v808_v32 }
 0x481   : > { %836 = vst.msk [vmem:[#allocation5] sm:$0xff] %vm411_vm1, %v832_v34 }
 0x494   : > { %v820_v36 = vpop.permute.xlu2 %819 }
 0x495   : > { %v833_v37 = vmul.f32 %v820_v36, %v809_v35 }
 0x497   : > { %837 = vst.msk [vmem:[#allocation5 + $0x8] sm:$0xff] %vm411_vm1, %v833_v37 }
 0x4b4   : > { %v825_v42 = vpop.permute.xlu0 %824 }
 0x4b5   : > { %v834_v46 = vmul.f32 %v825_v42, %v810_v44 }
 0x4b7   : > { %838 = vst.msk [vmem:[#allocation5 + $0x10] sm:$0xff] %vm411_vm1, %v834_v46 }
 0x4d4   : > { %v830_v45 = vpop.permute.xlu1 %829 }
 0x4d5   : > { %v835_v51 = vmul.f32 %v830_v45, %v811_v43 }
 0x4d7   : > { %839 = vst.msk [vmem:[#allocation5 + $0x18] sm:$0xff] %vm411_vm1, %v835_v51 }
 0x4de   : > { %v844_v52 = vld [vmem:[#allocation5 + $0x1] ss:$4 sm:$0xff]  ;;  %v840_v53 = vld [vmem:[#allocation5] ss:$4 sm:$0xff]  ;;  %v887_v54 = vld [vmem:[#allocation5 + $0x2] ss:$4 sm:$0xff] }
 0x4df   : > { %v845_v55 = vpack.c.bf16 %v844_v52, %v844_v52  ;;  %v841_v57 = vpack.c.bf16 %v840_v53, %v840_v53  ;;  %v888_v58 = vpack.c.bf16 %v887_v54, %v887_v54  ;;  %v912_v59 = vld [vmem:[#allocation5 + $0x3] ss:$4 sm:$0xff] }
 0x4e0   : > { %v913_v60 = vpack.c.bf16 %v912_v59, %v912_v59 }
 0x4e1   : > { %1108 = vmatmul.msk.bf16.vlgmr.msra.gmra.mxu1 %vm411_vm1, %v845_v55  ;;  %1109 = vmatmul.msk.bf16.vlgmr.msra.gmra.mxu2 %vm411_vm1, %v841_v57 }
 0x4e2   : > { %1110 = vmatmul.msk.bf16.vlgmr.msrb.gmra.mxu3 %vm411_vm1, %v888_v58  ;;  %1111 = vmatmul.msk.bf16.vlgmr.msrb.gmra.mxu0 %vm411_vm1, %v913_v60 }
 0x55e   : > { %v863_v61 = vpop.f32.mrf.mxu1 }
 0x55f   : > { %v931_v62 = vpop.f32.mrf.mxu0 }
 0x564   : > { %v882_v63 = vpop.f32.mrf.mxu2 }
 0x565   : > { %v883_v0 = vadd.f32 %v882_v63, %v863_v61  ;;  %v906_v1 = vpop.f32.mrf.mxu3 }
 0x566   : > { %v865_v2 = vpop.f32.mrf.mxu1 }
 0x567   : > { %v910_v3 = vadd.f32 %v906_v1, %v883_v0  ;;  %v933_v5 = vpop.f32.mrf.mxu0 }
 0x569   : > { %v935_v6 = vadd.f32 %v931_v62, %v910_v3 }
 0x56b   : > { %v940_v7 = vadd.f32 %v1230_v4, %v935_v6 }
 0x56c   : > { %v884_v8 = vpop.f32.mrf.mxu2 }
 0x56d   : > { %v908_v9 = vpop.f32.mrf.mxu3  ;;  %941 = vst.msk [vmem:[%s357_s15] sm:$0xff] %vm384_vm0, %v940_v7 }
 0x56e   : > { %1402 = shalt.err (!%p1399_p13)
}
 0x56f   : > { %1134 = dma.vmem_to_hbm [thread:$0]  (%p1613_p4), %s956_s23, 128, %s958_s16, %s943_s27  }
 0x570 PF: > { %s969_s3 = sand.u32 1, %s1445_s24   ;;  %p1151_p0 = pnand %p1073_p6, %p1621_p7 }
 0x571   : > { %s970_s1 = scalar_lea.sflag [#allocation8], %s969_s3 }
 0x572   : > { %p1152_p2 = pneg %p1151_p0 }
 0x574   : > { %1440 = dma.done.wait (%p1152_p2), %s970_s1, 128  }
 0x575   : > { %1442 = vsyncadd (%p1152_p2), %s970_s1, 4294967168  ;;  %s25_s29 = sadd.s32 1, %s1465_s29   ;;  %s1826_s24 = smov %s1449_s25 }
 0x576   : > { %p22_p5 = scmp.ge.s32.totalorder %s25_s29, 4   ;;  %s1827_s25 = smov %s1453_s26 }
 0x577   : > { %s1828_s26 = smov %s1619_s21  ;;  %s1829_s27 = smov %s1461_s28 }
 0x578   : > { %s1830_s28 = smov %s1832_s14  ;;  %24 = sbr.rel (!%p22_p5) target bundleno = 11 (0xb), region = 120 }
 0x57d   :  { %976 = vsyncpa [#allocation7], 1 }
 0x57e   :  { %978 = vsyncpa [#allocation7 + $0x1], 1 }
 0x57f   :  { %979 = vsyncpa [#allocation10], 1 }
 0x580   :  { %980 = vsyncpa [#allocation13], 1 }
 0x581   :  { %981 = vsyncpa [#allocation8], 1 }
 0x582   :  { %983 = vsyncpa [#allocation8 + $0x1], 1 }

</bundles_post_ra>
